<compile_context>
chip_gen: v6e
topology: v6e:2x2x1
jax: 0.10.0
libtpu: 0.0.40
codegen_flags: <defaults>
</compile_context>

<pallas_src>
import functools

import jax
import jax.numpy as jnp
from jax.experimental import pallas as pl
from jax.experimental.pallas import tpu as pltpu


def _banded_conv_matrix(w_hwio, width, pad, *, channel_major_rows):
    """Fold the kw taps + horizontal zero-padding of a KxK 'same' conv into
    K banded matrices (one per kh), each usable as a single dense MXU matmul.

    Rows index the input lane layout, columns the output lane layout
    (w-major, channel-minor).

    Returns shape (K, Cin*width, width*Cout) if channel_major_rows
    (rows = ci*width + wi, matches the NCHW-derived scratch of layer a),
    else (K, width*Cin, width*Cout) (rows = wi*Cin + ci, matches the
    interleaved intermediate of layer b).
    """
    K, _, cin, cout = w_hwio.shape
    wi = jnp.arange(width)[:, None]           # input column
    wo = jnp.arange(width)[None, :]           # output column
    kw = wi - wo + pad                        # horizontal tap connecting them
    valid = (kw >= 0) & (kw < K)              # off-band == horizontal padding
    kw_idx = jnp.clip(kw, 0, K - 1)
    # m[kh, wi, wo, ci, co] = w[kh, kw(wi, wo), ci, co]  (0 outside the band)
    m = w_hwio[:, kw_idx] * valid[None, :, :, None, None].astype(w_hwio.dtype)
    if channel_major_rows:
        m = jnp.transpose(m, (0, 3, 1, 2, 4))   # (K, Cin, Wi, Wo, Cout)
    else:
        m = jnp.transpose(m, (0, 1, 3, 2, 4))   # (K, Wi, Cin, Wo, Cout)
    return m.reshape(K, cin * width, width * cout)


def _conv_conv_kernel(x_ref, wa_ref, ba_ref, wb_ref, bb_ref, o_ref,
                      xpad_ref, midpad_ref, *,
                      nb, H, W, K, Cin, Cmid, Cout, pad):
    # x_ref:      (nb, Cin, H, W)        NCHW input block (no wrapper transpose)
    # wa_ref:     (K, Cin*W, W*Cmid)     bf16 banded layer-a weights
    # ba_ref:     (1, W*Cmid)            f32 bias, tiled over W
    # wb_ref:     (K, W*Cmid, W*Cout)    bf16 banded layer-b weights
    # bb_ref:     (1, W*Cout)            f32
    # o_ref:      (nb, H, W*Cout)        lane-dense output (NHWC, W/C flattened)
    # xpad_ref:   (nb, Hp, Cin*W)        f32 scratch, vertical halo only
    # midpad_ref: (nb, Hp, W*Cmid)       f32 scratch, vertical halo only
    f32 = jnp.float32
    Hp = H + 2 * pad

    # Zero only the vertical halo rows (4 tiny row stores).  Done every step
    # (not @pl.when(program_id==0)) so correctness holds when the parallel
    # batch axis is split across TensorCores on v7x.  The interior is fully
    # overwritten below; horizontal padding lives in the banded weights.
    xpad_ref[:, 0:pad, :] = jnp.zeros((nb, pad, Cin * W), f32)
    xpad_ref[:, pad + H:Hp, :] = jnp.zeros((nb, pad, Cin * W), f32)
    midpad_ref[:, 0:pad, :] = jnp.zeros((nb, pad, W * Cmid), f32)
    midpad_ref[:, pad + H:Hp, :] = jnp.zeros((nb, pad, W * Cmid), f32)

    # Drop the NCHW block straight into the scratch interior, channel-major
    # along lanes (lane = c*W + w).  No transpose, no lane interleave.
    xv = x_ref[...]                                     # (nb, Cin, H, W)
    for c in range(Cin):
        xpad_ref[:, pad:pad + H, c * W:(c + 1) * W] = xv[:, c]

    # Layer a: K accumulating MXU matmuls; bf16 operands, f32 accumulate.
    mid = jnp.zeros((nb * H, W * Cmid), f32)
    for kh in range(K):
        lhs = xpad_ref[:, kh:kh + H, :].reshape(nb * H, Cin * W)
        mid = mid + jnp.dot(lhs.astype(jnp.bfloat16), wa_ref[kh],
                            preferred_element_type=f32)
    mid = jnp.maximum(mid + ba_ref[...], 0.0)           # bias + ReLU in f32

    # Intermediate never leaves VMEM.
    midpad_ref[:, pad:pad + H, :] = mid.reshape(nb, H, W * Cmid)

    # Layer b: K accumulating MXU matmuls.
    out = jnp.zeros((nb * H, W * Cout), f32)
    for kh in range(K):
        lhs = midpad_ref[:, kh:kh + H, :].reshape(nb * H, W * Cmid)
        out = out + jnp.dot(lhs.astype(jnp.bfloat16), wb_ref[kh],
                            preferred_element_type=f32)
    out = jnp.maximum(out + bb_ref[...], 0.0)

    # Lane-dense store; W*Cout == 128 at the reference size -> unmasked vst.
    o_ref[...] = out.reshape(nb, H, W * Cout)


def conv_conv_pallas(x_nchw, wa, ba, wb, bb, *, padding=1, nb=None):
    """Fused (conv3x3 + ReLU) x2.  Input NCHW, returns NCHW."""
    N, Cin, H, W = x_nchw.shape
    K = wa.shape[0]
    Cmid = wa.shape[-1]
    Cout = wb.shape[-1]
    assert wa.shape == (K, K, Cin, Cmid) and wb.shape == (K, K, Cmid, Cout)
    # canon_conv: K=3, stride=1, padding=1 -> 'same' convs; the fused
    # VMEM-resident intermediate relies on that.
    assert H + 2 * padding - K + 1 == H and W + 2 * padding - K + 1 == W, \
        "fused conv_conv kernel assumes same-size convs"
    # Lane-dense output writeback wants W*Cout to be a multiple of 128
    # (true at the reference size 16*8); other shapes stay correct but store
    # with lane masks.

    if nb is None:
        # >=2 grid steps when possible so the batch axis can shard across both
        # TensorCores on v7x; nb must divide N so every block is full.
        nb = max(1, N // 2)
        while N % nb:
            nb -= 1
    assert N % nb == 0

    # Pre-expand weights into K banded matrices per layer (kw taps +
    # horizontal zero padding folded in); bf16 MXU operands.
    wa_band = _banded_conv_matrix(
        wa.astype(jnp.float32), W, padding, channel_major_rows=True
    ).astype(jnp.bfloat16)                                # (K, Cin*W, W*Cmid)
    wb_band = _banded_conv_matrix(
        wb.astype(jnp.float32), W, padding, channel_major_rows=False
    ).astype(jnp.bfloat16)                                # (K, W*Cmid, W*Cout)
    ba_row = jnp.tile(ba.astype(jnp.float32), (W,)).reshape(1, W * Cmid)
    bb_row = jnp.tile(bb.astype(jnp.float32), (W,)).reshape(1, W * Cout)

    kernel = functools.partial(
        _conv_conv_kernel, nb=nb, H=H, W=W, K=K,
        Cin=Cin, Cmid=Cmid, Cout=Cout, pad=padding)

    Hp = H + 2 * padding
    out = pl.pallas_call(
        kernel,
        out_shape=jax.ShapeDtypeStruct((N, H, W * Cout), jnp.float32),
        grid=(N // nb,),
        in_specs=[
            pl.BlockSpec((nb, Cin, H, W), lambda n: (n, 0, 0, 0)),
            pl.BlockSpec((K, Cin * W, W * Cmid), lambda n: (0, 0, 0)),
            pl.BlockSpec((1, W * Cmid), lambda n: (0, 0)),
            pl.BlockSpec((K, W * Cmid, W * Cout), lambda n: (0, 0, 0)),
            pl.BlockSpec((1, W * Cout), lambda n: (0, 0)),
        ],
        out_specs=pl.BlockSpec((nb, H, W * Cout), lambda n: (n, 0, 0)),
        scratch_shapes=[
            pltpu.VMEM((nb, Hp, Cin * W), jnp.float32),    # padded input
            pltpu.VMEM((nb, Hp, W * Cmid), jnp.float32),   # padded intermediate
        ],
        compiler_params=pltpu.CompilerParams(
            dimension_semantics=("parallel",),   # batch shards across TCs on v7x
        ),
    )(x_nchw.astype(jnp.float32), wa_band, ba_row, wb_band, bb_row)

    # (N, H, W*Cout) is NHWC with the last two axes flattened; one transpose
    # gives NCHW back.  (Emitting NCHW directly would need an in-kernel
    # sublane<->lane relayout or narrow masked stores; not worth it here.)
    return jnp.transpose(out.reshape(N, H, W, Cout), (0, 3, 1, 2))


def init_conv_params(key, in_maps, out_maps, kernel_size):
    # Mirrors PyTorch Conv2d default init:
    # uniform(-1/sqrt(fan_in), 1/sqrt(fan_in)), fan_in = Cin * K * K.
    kw_key, kb_key = jax.random.split(key)
    fan_in = in_maps * kernel_size * kernel_size
    bound = 1.0 / jnp.sqrt(jnp.float32(fan_in))
    w = jax.random.uniform(
        kw_key, (kernel_size, kernel_size, in_maps, out_maps),
        dtype=jnp.float32, minval=-bound, maxval=bound)
    b = jax.random.uniform(
        kb_key, (out_maps,), dtype=jnp.float32, minval=-bound, maxval=bound)
    return w, b


def conv_conv_forward(x_nchw, params):
    """Pallas equivalent of conv_conv.forward; input/output are NCHW."""
    return conv_conv_pallas(
        x_nchw, params["wa"], params["ba"], params["wb"], params["bb"],
        padding=1)


def _reference_forward(x_nchw, params):
    # Pure-JAX (XLA) reference for the correctness check.
    def conv(x, w, b):
        y = jax.lax.conv_general_dilated(
            x, w, window_strides=(1, 1), padding=[(1, 1), (1, 1)],
            dimension_numbers=("NCHW", "HWIO", "NCHW"))
        return jnp.maximum(y + b.reshape(1, -1, 1, 1), 0.0)

    x = conv(x_nchw, params["wa"], params["ba"])
    return conv(x, params["wb"], params["bb"])


if __name__ == "__main__":
    in_maps, out_maps, kernel_size = 4, 8, 3
    N, H, W = 2, 16, 16

    key = jax.random.PRNGKey(0)
    kx, ka, kb = jax.random.split(key, 3)

    wa, ba = init_conv_params(ka, in_maps, out_maps, kernel_size)
    wb, bb = init_conv_params(kb, out_maps, out_maps, kernel_size)
    params = {"wa": wa, "ba": ba, "wb": wb, "bb": bb}

    x = jax.random.normal(kx, (N, in_maps, H, W), dtype=jnp.float32)

    fwd = jax.jit(conv_conv_forward)
    out = jax.block_until_ready(fwd(x, params))
    ref = _reference_forward(x, params)

    assert out.shape == (N, out_maps, H, W)
    # bf16 MXU operands with f32 accumulation -> loosened tolerance.
    err = float(jnp.max(jnp.abs(out - ref)))
    assert jnp.allclose(out, ref, atol=5e-2, rtol=5e-2), f"max abs err {err}"

    print("KERNEL_OK")
</pallas_src>

<mosaic_0001>
module attributes {stable_mosaic.version = 11 : i64} {
  func.func @_conv_conv_kernel(%arg0: i32, %arg1: memref<1x4x16x16xf32, #tpu.memory_space<vmem>>, %arg2: memref<3x64x128xbf16, #tpu.memory_space<vmem>>, %arg3: memref<1x128xf32, #tpu.memory_space<vmem>>, %arg4: memref<3x128x128xbf16, #tpu.memory_space<vmem>>, %arg5: memref<1x128xf32, #tpu.memory_space<vmem>>, %arg6: memref<1x16x128xf32, #tpu.memory_space<vmem>>, %arg7: memref<1x18x64xf32, #tpu.memory_space<vmem>>, %arg8: memref<1x18x128xf32, #tpu.memory_space<vmem>>) attributes {dimension_semantics = [#tpu.dimension_semantics<parallel>], iteration_bounds = array<i64: 2>, scalar_prefetch = 0 : i64, scratch_operands = 2 : i64, tpu.core_type = #tpu.core_type<tc>, window_params = [{transform_indices = @transform_0, window_bounds = array<i64: 1, 4, 16, 16>}, {pipeline_mode = #tpu.pipeline_mode<synchronous>, transform_indices = @transform_1, window_bounds = array<i64: 3, 64, 128>}, {pipeline_mode = #tpu.pipeline_mode<synchronous>, transform_indices = @transform_2, window_bounds = array<i64: 1, 128>}, {pipeline_mode = #tpu.pipeline_mode<synchronous>, transform_indices = @transform_3, window_bounds = array<i64: 3, 128, 128>}, {pipeline_mode = #tpu.pipeline_mode<synchronous>, transform_indices = @transform_4, window_bounds = array<i64: 1, 128>}, {transform_indices = @transform_5, window_bounds = array<i64: 1, 16, 128>}]} {
    %cst = arith.constant 0.000000e+00 : f32
    %0 = vector.broadcast %cst : f32 to vector<1x1x64xf32>
    %c0 = arith.constant 0 : index
    %c0_0 = arith.constant 0 : index
    %c0_1 = arith.constant 0 : index
    %1 = vector.load %arg7[%c0, %c0_0, %c0_1] : memref<1x18x64xf32, #tpu.memory_space<vmem>>, vector<1x1x64xf32>
    tpu.vector_store %arg7[%c0, %c0_0, %c0_1], %0 {strides = array<i32>} : memref<1x18x64xf32, #tpu.memory_space<vmem>>, vector<1x1x64xf32>,
    %cst_2 = arith.constant 0.000000e+00 : f32
    %2 = vector.broadcast %cst_2 : f32 to vector<1x1x64xf32>
    %c0_3 = arith.constant 0 : index
    %c17 = arith.constant 17 : index
    %c0_4 = arith.constant 0 : index
    %3 = vector.load %arg7[%c0_3, %c17, %c0_4] : memref<1x18x64xf32, #tpu.memory_space<vmem>>, vector<1x1x64xf32>
    tpu.vector_store %arg7[%c0_3, %c17, %c0_4], %2 {strides = array<i32>} : memref<1x18x64xf32, #tpu.memory_space<vmem>>, vector<1x1x64xf32>,
    %cst_5 = arith.constant 0.000000e+00 : f32
    %4 = vector.broadcast %cst_5 : f32 to vector<1x1x128xf32>
    %c0_6 = arith.constant 0 : index
    %c0_7 = arith.constant 0 : index
    %c0_8 = arith.constant 0 : index
    %5 = vector.load %arg8[%c0_6, %c0_7, %c0_8] : memref<1x18x128xf32, #tpu.memory_space<vmem>>, vector<1x1x128xf32>
    tpu.vector_store %arg8[%c0_6, %c0_7, %c0_8], %4 {strides = array<i32>} : memref<1x18x128xf32, #tpu.memory_space<vmem>>, vector<1x1x128xf32>,
    %cst_9 = arith.constant 0.000000e+00 : f32
    %6 = vector.broadcast %cst_9 : f32 to vector<1x1x128xf32>
    %c0_10 = arith.constant 0 : index
    %c17_11 = arith.constant 17 : index
    %c0_12 = arith.constant 0 : index
    %7 = vector.load %arg8[%c0_10, %c17_11, %c0_12] : memref<1x18x128xf32, #tpu.memory_space<vmem>>, vector<1x1x128xf32>
    tpu.vector_store %arg8[%c0_10, %c17_11, %c0_12], %6 {strides = array<i32>} : memref<1x18x128xf32, #tpu.memory_space<vmem>>, vector<1x1x128xf32>,
    %c0_13 = arith.constant 0 : index
    %c0_14 = arith.constant 0 : index
    %c0_15 = arith.constant 0 : index
    %c0_16 = arith.constant 0 : index
    %8 = vector.load %arg1[%c0_13, %c0_14, %c0_15, %c0_16] : memref<1x4x16x16xf32, #tpu.memory_space<vmem>>, vector<1x4x16x16xf32>
    %9 = vector.extract_strided_slice %8 {offsets = [0, 0, 0, 0], sizes = [1, 1, 16, 16], strides = [1, 1, 1, 1]} : vector<1x4x16x16xf32> to vector<1x1x16x16xf32>
    %10 = vector.shape_cast %9 : vector<1x1x16x16xf32> to vector<1x16x16xf32>
    %c0_17 = arith.constant 0 : index
    %c1 = arith.constant 1 : index
    %c0_18 = arith.constant 0 : index
    %11 = vector.load %arg7[%c0_17, %c1, %c0_18] : memref<1x18x64xf32, #tpu.memory_space<vmem>>, vector<1x16x16xf32>
    tpu.vector_store %arg7[%c0_17, %c1, %c0_18], %10 {strides = array<i32>} : memref<1x18x64xf32, #tpu.memory_space<vmem>>, vector<1x16x16xf32>,
    %12 = vector.extract_strided_slice %8 {offsets = [0, 1, 0, 0], sizes = [1, 1, 16, 16], strides = [1, 1, 1, 1]} : vector<1x4x16x16xf32> to vector<1x1x16x16xf32>
    %13 = vector.shape_cast %12 : vector<1x1x16x16xf32> to vector<1x16x16xf32>
    %c0_19 = arith.constant 0 : index
    %c1_20 = arith.constant 1 : index
    %c16 = arith.constant 16 : index
    %14 = vector.load %arg7[%c0_19, %c1_20, %c16] : memref<1x18x64xf32, #tpu.memory_space<vmem>>, vector<1x16x16xf32>
    tpu.vector_store %arg7[%c0_19, %c1_20, %c16], %13 {strides = array<i32>} : memref<1x18x64xf32, #tpu.memory_space<vmem>>, vector<1x16x16xf32>,
    %15 = vector.extract_strided_slice %8 {offsets = [0, 2, 0, 0], sizes = [1, 1, 16, 16], strides = [1, 1, 1, 1]} : vector<1x4x16x16xf32> to vector<1x1x16x16xf32>
    %16 = vector.shape_cast %15 : vector<1x1x16x16xf32> to vector<1x16x16xf32>
    %c0_21 = arith.constant 0 : index
    %c1_22 = arith.constant 1 : index
    %c32 = arith.constant 32 : index
    %17 = vector.load %arg7[%c0_21, %c1_22, %c32] : memref<1x18x64xf32, #tpu.memory_space<vmem>>, vector<1x16x16xf32>
    tpu.vector_store %arg7[%c0_21, %c1_22, %c32], %16 {strides = array<i32>} : memref<1x18x64xf32, #tpu.memory_space<vmem>>, vector<1x16x16xf32>,
    %18 = vector.extract_strided_slice %8 {offsets = [0, 3, 0, 0], sizes = [1, 1, 16, 16], strides = [1, 1, 1, 1]} : vector<1x4x16x16xf32> to vector<1x1x16x16xf32>
    %19 = vector.shape_cast %18 : vector<1x1x16x16xf32> to vector<1x16x16xf32>
    %c0_23 = arith.constant 0 : index
    %c1_24 = arith.constant 1 : index
    %c48 = arith.constant 48 : index
    %20 = vector.load %arg7[%c0_23, %c1_24, %c48] : memref<1x18x64xf32, #tpu.memory_space<vmem>>, vector<1x16x16xf32>
    tpu.vector_store %arg7[%c0_23, %c1_24, %c48], %19 {strides = array<i32>} : memref<1x18x64xf32, #tpu.memory_space<vmem>>, vector<1x16x16xf32>,
    %cst_25 = arith.constant 0.000000e+00 : f32
    %21 = vector.broadcast %cst_25 : f32 to vector<16x128xf32>
    %c0_26 = arith.constant 0 : index
    %c0_27 = arith.constant 0 : index
    %c0_28 = arith.constant 0 : index
    %22 = vector.load %arg7[%c0_26, %c0_27, %c0_28] : memref<1x18x64xf32, #tpu.memory_space<vmem>>, vector<1x16x64xf32>
    %23 = vector.shape_cast %22 : vector<1x16x64xf32> to vector<16x64xf32>
    %24 = arith.truncf %23 : vector<16x64xf32> to vector<16x64xbf16>
    %c0_29 = arith.constant 0 : index
    %c0_30 = arith.constant 0 : index
    %c0_31 = arith.constant 0 : index
    %25 = vector.load %arg2[%c0_29, %c0_30, %c0_31] : memref<3x64x128xbf16, #tpu.memory_space<vmem>>, vector<1x64x128xbf16>
    %26 = vector.shape_cast %25 : vector<1x64x128xbf16> to vector<64x128xbf16>
    %cst_32 = arith.constant dense<0.000000e+00> : vector<16x128xf32>
    %27 = tpu.matmul %24, %26, %cst_32 {dimension_numbers = #tpu.dot_dimension_numbers<[1], [0], [0], [1], [0, 0, 1, 1], [], []>} : vector<16x64xbf16>, vector<64x128xbf16>, vector<16x128xf32> -> vector<16x128xf32>
    %28 = arith.addf %21, %27 : vector<16x128xf32>
    %c0_33 = arith.constant 0 : index
    %c1_34 = arith.constant 1 : index
    %c0_35 = arith.constant 0 : index
    %29 = vector.load %arg7[%c0_33, %c1_34, %c0_35] : memref<1x18x64xf32, #tpu.memory_space<vmem>>, vector<1x16x64xf32>
    %30 = vector.shape_cast %29 : vector<1x16x64xf32> to vector<16x64xf32>
    %31 = arith.truncf %30 : vector<16x64xf32> to vector<16x64xbf16>
    %c1_36 = arith.constant 1 : index
    %c0_37 = arith.constant 0 : index
    %c0_38 = arith.constant 0 : index
    %32 = vector.load %arg2[%c1_36, %c0_37, %c0_38] : memref<3x64x128xbf16, #tpu.memory_space<vmem>>, vector<1x64x128xbf16>
    %33 = vector.shape_cast %32 : vector<1x64x128xbf16> to vector<64x128xbf16>
    %cst_39 = arith.constant dense<0.000000e+00> : vector<16x128xf32>
    %34 = tpu.matmul %31, %33, %cst_39 {dimension_numbers = #tpu.dot_dimension_numbers<[1], [0], [0], [1], [0, 0, 1, 1], [], []>} : vector<16x64xbf16>, vector<64x128xbf16>, vector<16x128xf32> -> vector<16x128xf32>
    %35 = arith.addf %28, %34 : vector<16x128xf32>
    %c0_40 = arith.constant 0 : index
    %c2 = arith.constant 2 : index
    %c0_41 = arith.constant 0 : index
    %36 = vector.load %arg7[%c0_40, %c2, %c0_41] : memref<1x18x64xf32, #tpu.memory_space<vmem>>, vector<1x16x64xf32>
    %37 = vector.shape_cast %36 : vector<1x16x64xf32> to vector<16x64xf32>
    %38 = arith.truncf %37 : vector<16x64xf32> to vector<16x64xbf16>
    %c2_42 = arith.constant 2 : index
    %c0_43 = arith.constant 0 : index
    %c0_44 = arith.constant 0 : index
    %39 = vector.load %arg2[%c2_42, %c0_43, %c0_44] : memref<3x64x128xbf16, #tpu.memory_space<vmem>>, vector<1x64x128xbf16>
    %40 = vector.shape_cast %39 : vector<1x64x128xbf16> to vector<64x128xbf16>
    %cst_45 = arith.constant dense<0.000000e+00> : vector<16x128xf32>
    %41 = tpu.matmul %38, %40, %cst_45 {dimension_numbers = #tpu.dot_dimension_numbers<[1], [0], [0], [1], [0, 0, 1, 1], [], []>} : vector<16x64xbf16>, vector<64x128xbf16>, vector<16x128xf32> -> vector<16x128xf32>
    %42 = arith.addf %35, %41 : vector<16x128xf32>
    %c0_46 = arith.constant 0 : index
    %c0_47 = arith.constant 0 : index
    %43 = vector.load %arg3[%c0_46, %c0_47] : memref<1x128xf32, #tpu.memory_space<vmem>>, vector<1x128xf32>
    %44 = vector.broadcast %43 : vector<1x128xf32> to vector<16x128xf32>
    %45 = arith.addf %42, %44 : vector<16x128xf32>
    %cst_48 = arith.constant 0.000000e+00 : f32
    %46 = vector.broadcast %cst_48 : f32 to vector<16x128xf32>
    %47 = arith.maximumf %45, %46 : vector<16x128xf32>
    %48 = vector.shape_cast %47 : vector<16x128xf32> to vector<1x16x128xf32>
    %c0_49 = arith.constant 0 : index
    %c1_50 = arith.constant 1 : index
    %c0_51 = arith.constant 0 : index
    %49 = vector.load %arg8[%c0_49, %c1_50, %c0_51] : memref<1x18x128xf32, #tpu.memory_space<vmem>>, vector<1x16x128xf32>
    tpu.vector_store %arg8[%c0_49, %c1_50, %c0_51], %48 {strides = array<i32>} : memref<1x18x128xf32, #tpu.memory_space<vmem>>, vector<1x16x128xf32>,
    %cst_52 = arith.constant 0.000000e+00 : f32
    %50 = vector.broadcast %cst_52 : f32 to vector<16x128xf32>
    %c0_53 = arith.constant 0 : index
    %c0_54 = arith.constant 0 : index
    %c0_55 = arith.constant 0 : index
    %51 = vector.load %arg8[%c0_53, %c0_54, %c0_55] : memref<1x18x128xf32, #tpu.memory_space<vmem>>, vector<1x16x128xf32>
    %52 = vector.shape_cast %51 : vector<1x16x128xf32> to vector<16x128xf32>
    %53 = arith.truncf %52 : vector<16x128xf32> to vector<16x128xbf16>
    %c0_56 = arith.constant 0 : index
    %c0_57 = arith.constant 0 : index
    %c0_58 = arith.constant 0 : index
    %54 = vector.load %arg4[%c0_56, %c0_57, %c0_58] : memref<3x128x128xbf16, #tpu.memory_space<vmem>>, vector<1x128x128xbf16>
    %55 = vector.shape_cast %54 : vector<1x128x128xbf16> to vector<128x128xbf16>
    %cst_59 = arith.constant dense<0.000000e+00> : vector<16x128xf32>
    %56 = tpu.matmul %53, %55, %cst_59 {dimension_numbers = #tpu.dot_dimension_numbers<[1], [0], [0], [1], [0, 0, 1, 1], [], []>} : vector<16x128xbf16>, vector<128x128xbf16>, vector<16x128xf32> -> vector<16x128xf32>
    %57 = arith.addf %50, %56 : vector<16x128xf32>
    %c0_60 = arith.constant 0 : index
    %c1_61 = arith.constant 1 : index
    %c0_62 = arith.constant 0 : index
    %58 = vector.load %arg8[%c0_60, %c1_61, %c0_62] : memref<1x18x128xf32, #tpu.memory_space<vmem>>, vector<1x16x128xf32>
    %59 = vector.shape_cast %58 : vector<1x16x128xf32> to vector<16x128xf32>
    %60 = arith.truncf %59 : vector<16x128xf32> to vector<16x128xbf16>
    %c1_63 = arith.constant 1 : index
    %c0_64 = arith.constant 0 : index
    %c0_65 = arith.constant 0 : index
    %61 = vector.load %arg4[%c1_63, %c0_64, %c0_65] : memref<3x128x128xbf16, #tpu.memory_space<vmem>>, vector<1x128x128xbf16>
    %62 = vector.shape_cast %61 : vector<1x128x128xbf16> to vector<128x128xbf16>
    %cst_66 = arith.constant dense<0.000000e+00> : vector<16x128xf32>
    %63 = tpu.matmul %60, %62, %cst_66 {dimension_numbers = #tpu.dot_dimension_numbers<[1], [0], [0], [1], [0, 0, 1, 1], [], []>} : vector<16x128xbf16>, vector<128x128xbf16>, vector<16x128xf32> -> vector<16x128xf32>
    %64 = arith.addf %57, %63 : vector<16x128xf32>
    %c0_67 = arith.constant 0 : index
    %c2_68 = arith.constant 2 : index
    %c0_69 = arith.constant 0 : index
    %65 = vector.load %arg8[%c0_67, %c2_68, %c0_69] : memref<1x18x128xf32, #tpu.memory_space<vmem>>, vector<1x16x128xf32>
    %66 = vector.shape_cast %65 : vector<1x16x128xf32> to vector<16x128xf32>
    %67 = arith.truncf %66 : vector<16x128xf32> to vector<16x128xbf16>
    %c2_70 = arith.constant 2 : index
    %c0_71 = arith.constant 0 : index
    %c0_72 = arith.constant 0 : index
    %68 = vector.load %arg4[%c2_70, %c0_71, %c0_72] : memref<3x128x128xbf16, #tpu.memory_space<vmem>>, vector<1x128x128xbf16>
    %69 = vector.shape_cast %68 : vector<1x128x128xbf16> to vector<128x128xbf16>
    %cst_73 = arith.constant dense<0.000000e+00> : vector<16x128xf32>
    %70 = tpu.matmul %67, %69, %cst_73 {dimension_numbers = #tpu.dot_dimension_numbers<[1], [0], [0], [1], [0, 0, 1, 1], [], []>} : vector<16x128xbf16>, vector<128x128xbf16>, vector<16x128xf32> -> vector<16x128xf32>
    %71 = arith.addf %64, %70 : vector<16x128xf32>
    %c0_74 = arith.constant 0 : index
    %c0_75 = arith.constant 0 : index
    %72 = vector.load %arg5[%c0_74, %c0_75] : memref<1x128xf32, #tpu.memory_space<vmem>>, vector<1x128xf32>
    %73 = vector.broadcast %72 : vector<1x128xf32> to vector<16x128xf32>
    %74 = arith.addf %71, %73 : vector<16x128xf32>
    %cst_76 = arith.constant 0.000000e+00 : f32
    %75 = vector.broadcast %cst_76 : f32 to vector<16x128xf32>
    %76 = arith.maximumf %74, %75 : vector<16x128xf32>
    %77 = vector.shape_cast %76 : vector<16x128xf32> to vector<1x16x128xf32>
    %c0_77 = arith.constant 0 : index
    %c0_78 = arith.constant 0 : index
    %c0_79 = arith.constant 0 : index
    %78 = vector.load %arg6[%c0_77, %c0_78, %c0_79] : memref<1x16x128xf32, #tpu.memory_space<vmem>>, vector<1x16x128xf32>
    tpu.vector_store %arg6[%c0_77, %c0_78, %c0_79], %77 {strides = array<i32>} : memref<1x16x128xf32, #tpu.memory_space<vmem>>, vector<1x16x128xf32>,
    return
  }
  func.func @transform_0(%arg0: i32) -> (i32, i32, i32, i32) {
    %c0_i32 = arith.constant 0 : i32
    %c0_i32_0 = arith.constant 0 : i32
    %c0_i32_1 = arith.constant 0 : i32
    %c0_i32_2 = arith.constant 0 : i32
    return %arg0, %c0_i32, %c0_i32_0, %c0_i32_1 : i32, i32, i32, i32
  }
  func.func @transform_1(%arg0: i32) -> (i32, i32, i32) {
    %c0_i32 = arith.constant 0 : i32
    %c0_i32_0 = arith.constant 0 : i32
    %c0_i32_1 = arith.constant 0 : i32
    %c0_i32_2 = arith.constant 0 : i32
    return %c0_i32, %c0_i32_0, %c0_i32_1 : i32, i32, i32
  }
  func.func @transform_2(%arg0: i32) -> (i32, i32) {
    %c0_i32 = arith.constant 0 : i32
    %c0_i32_0 = arith.constant 0 : i32
    %c0_i32_1 = arith.constant 0 : i32
    return %c0_i32, %c0_i32_0 : i32, i32
  }
  func.func @transform_3(%arg0: i32) -> (i32, i32, i32) {
    %c0_i32 = arith.constant 0 : i32
    %c0_i32_0 = arith.constant 0 : i32
    %c0_i32_1 = arith.constant 0 : i32
    %c0_i32_2 = arith.constant 0 : i32
    return %c0_i32, %c0_i32_0, %c0_i32_1 : i32, i32, i32
  }
  func.func @transform_4(%arg0: i32) -> (i32, i32) {
    %c0_i32 = arith.constant 0 : i32
    %c0_i32_0 = arith.constant 0 : i32
    %c0_i32_1 = arith.constant 0 : i32
    return %c0_i32, %c0_i32_0 : i32, i32
  }
  func.func @transform_5(%arg0: i32) -> (i32, i32, i32) {
    %c0_i32 = arith.constant 0 : i32
    %c0_i32_0 = arith.constant 0 : i32
    %c0_i32_1 = arith.constant 0 : i32
    return %arg0, %c0_i32, %c0_i32_0 : i32, i32, i32
  }
}

</mosaic_0001>

<bundles_post_ra>
// kernel: tile.13
= control target key start
LH: loop header
LB: loop body
LE: loop exit
PB: predicated region body
PF: predicated region fallthrough
CT: control target
= control target key end

     0   :  { %s28_s0 = inlined_call_operand.vmem [shape: f32[8], index: 0, kind: input, shape index: {}]   ;;  %s29_s1 = inlined_call_operand.vmem [shape: f32[16,8], index: 1, kind: output, shape index: {}]  }
   0x1   :  { %v4_v0 = vld [vmem:[%s28_s0] ss:$0 sm:$0xff] }
   0x2   :  { %5 = vst [vmem:[%s29_s1] sm:$0xff] %v4_v0  ;;  %8 = vst [vmem:[%s29_s1 + $0x8] sm:$0xff] %v4_v0 }

// kernel: tile.14
= control target key start
LH: loop header
LB: loop body
LE: loop exit
PB: predicated region body
PF: predicated region fallthrough
CT: control target
= control target key end

     0   :  { %s133_s10 = smov 120   ;;  %s134_s11 = smov 104   ;;  %vm3_vm0 = vcmask 64512   ;;  %vm9_vm1 = vcmask 1048512   ;;  %vm15_vm2 = vcmask 982912   ;;  %vm21_vm3 = vcmask 917312   ;;  %s209_s0 = inlined_call_operand.vmem [shape: f32[16,8], index: 0, kind: input, shape index: {}]   ;;  %s210_s1 = inlined_call_operand.vmem [shape: f32[1,128], index: 1, kind: output, shape index: {}]  }
   0x1   :  { %v103_v0 = vld [vmem:[%s209_s0 + $0xf] sm:$0x1]   ;;  %v105_v1 = vld [vmem:[%s209_s0 + $0xd] sm:$0x1]   ;;  %v104_v2 = vld [vmem:[%s209_s0 + $0xe] sm:$0x1]  }
   0x2   :  { %7 = vrot.lane.b32.xlu0 %v103_v0, %s133_s10  ;;  %19 = vrot.lane.b32.xlu1 %v105_v1, %s134_s11  ;;  %v106_v3 = vld [vmem:[%s209_s0 + $0xc] sm:$0x1]   ;;  %s135_s16 = smov 112   ;;  %s136_s17 = smov 96   ;;  %v107_v4 = vld [vmem:[%s209_s0 + $0xb] sm:$0x1]  }
   0x3   :  { %v108_v5 = vld [vmem:[%s209_s0 + $0xa] sm:$0x1]   ;;  %v2_v6 = vld [vmem:[%s209_s0] sm:$0x1]   ;;  %s137_s24 = smov 88   ;;  %s138_s25 = smov 80  }
   0x4   :  { %4 = vst.msk [vmem:[#allocation0] sm:$0x1] %vm3_vm0, %v2_v6   ;;  %v109_v7 = vld [vmem:[%s209_s0 + $0x9] sm:$0x1]   ;;  %v110_v8 = vld [vmem:[%s209_s0 + $0x8] sm:$0x1]  }
   0x5   :  { %s139_s30 = smov 72   ;;  %s140_s2 = smov 64   ;;  %v111_v9 = vld [vmem:[%s209_s0 + $0x7] sm:$0x1]   ;;  %v112_v10 = vld [vmem:[%s209_s0 + $0x6] sm:$0x1]  }
   0x6   :  { %13 = vrot.lane.b32.xlu0 %v104_v2, %s135_s16  ;;  %25 = vrot.lane.b32.xlu1 %v106_v3, %s136_s17  ;;  %s141_s7 = smov 56   ;;  %s142_s8 = smov 48   ;;  %v113_v11 = vld [vmem:[%s209_s0 + $0x5] sm:$0x1]   ;;  %v114_v12 = vld [vmem:[%s209_s0 + $0x4] sm:$0x1]  }
   0x7   :  { %s143_s13 = smov 40   ;;  %s144_s14 = smov 32   ;;  %v115_v13 = vld [vmem:[%s209_s0 + $0x3] sm:$0x1]   ;;  %v116_v14 = vld [vmem:[%s209_s0 + $0x2] sm:$0x1]  }
   0x8   :  { %s145_s19 = smov 24   ;;  %s146_s20 = smov 16   ;;  %v117_v15 = vld [vmem:[%s209_s0 + $0x1] sm:$0x1]   ;;  %vm27_vm4 = vcmask 851712   ;;  %vm33_vm5 = vcmask 786112  }
   0x9   :  { %s147_s0 = smov 8   ;;  %vm39_vm6 = vcmask 720512   ;;  %vm45_vm7 = vcmask 654912   ;;  %vm51_vm8 = vcmask 589312   ;;  %vm57_vm9 = vcmask 523712  }
   0xa   :  { %31 = vrot.lane.b32.xlu0 %v107_v4, %s137_s24  ;;  %37 = vrot.lane.b32.xlu1 %v108_v5, %s138_s25  ;;  %vm63_vm10 = vcmask 458112   ;;  %vm69_vm11 = vcmask 392512   ;;  %vm75_vm12 = vcmask 326912   ;;  %vm81_vm13 = vcmask 261312  }
   0xb   :  { %vm87_vm14 = vcmask 195712   ;;  %vm93_vm15 = vcmask 130112  }
   0xe   :  { %43 = vrot.lane.b32.xlu0 %v109_v7, %s139_s30  ;;  %49 = vrot.lane.b32.xlu1 %v110_v8, %s140_s2 }
  0x12   :  { %55 = vrot.lane.b32.xlu0 %v111_v9, %s141_s7  ;;  %61 = vrot.lane.b32.xlu1 %v112_v10, %s142_s8 }
  0x16   :  { %67 = vrot.lane.b32.xlu0 %v113_v11, %s143_s13  ;;  %73 = vrot.lane.b32.xlu1 %v114_v12, %s144_s14 }
  0x1a   :  { %79 = vrot.lane.b32.xlu0 %v115_v13, %s145_s19  ;;  %85 = vrot.lane.b32.xlu1 %v116_v14, %s146_s20 }
  0x1e   :  { %91 = vrot.lane.b32.xlu0 %v117_v15, %s147_s0 }
  0x74   :  { %v8_v16 = vpop.permute.xlu0 %7   ;;  %v20_v17 = vpop.permute.xlu1 %19  }
  0x75   :  { %10 = vst.msk [vmem:[#allocation0] sm:$0x1] %vm9_vm1, %v8_v16  }
  0x78   :  { %v14_v18 = vpop.permute.xlu0 %13   ;;  %v26_v19 = vpop.permute.xlu1 %25  }
  0x79   :  { %16 = vst.msk [vmem:[#allocation0] sm:$0x1] %vm15_vm2, %v14_v18  }
  0x7a   :  { %22 = vst.msk [vmem:[#allocation0] sm:$0x1] %vm21_vm3, %v20_v17  }
  0x7b   :  { %28 = vst.msk [vmem:[#allocation0] sm:$0x1] %vm27_vm4, %v26_v19  }
  0x7c   :  { %v32_v20 = vpop.permute.xlu0 %31   ;;  %v38_v21 = vpop.permute.xlu1 %37  }
  0x7d   :  { %34 = vst.msk [vmem:[#allocation0] sm:$0x1] %vm33_vm5, %v32_v20  }
  0x7e   :  { %40 = vst.msk [vmem:[#allocation0] sm:$0x1] %vm39_vm6, %v38_v21  }
  0x80   :  { %v44_v22 = vpop.permute.xlu0 %43   ;;  %v50_v23 = vpop.permute.xlu1 %49  }
  0x81   :  { %46 = vst.msk [vmem:[#allocation0] sm:$0x1] %vm45_vm7, %v44_v22  }
  0x82   :  { %52 = vst.msk [vmem:[#allocation0] sm:$0x1] %vm51_vm8, %v50_v23  }
  0x84   :  { %v56_v24 = vpop.permute.xlu0 %55   ;;  %v62_v25 = vpop.permute.xlu1 %61  }
  0x85   :  { %58 = vst.msk [vmem:[#allocation0] sm:$0x1] %vm57_vm9, %v56_v24  }
  0x86   :  { %64 = vst.msk [vmem:[#allocation0] sm:$0x1] %vm63_vm10, %v62_v25  }
  0x88   :  { %v68_v26 = vpop.permute.xlu0 %67   ;;  %v74_v27 = vpop.permute.xlu1 %73  }
  0x89   :  { %70 = vst.msk [vmem:[#allocation0] sm:$0x1] %vm69_vm11, %v68_v26  }
  0x8a   :  { %76 = vst.msk [vmem:[#allocation0] sm:$0x1] %vm75_vm12, %v74_v27  }
  0x8c   :  { %v80_v28 = vpop.permute.xlu0 %79   ;;  %v86_v29 = vpop.permute.xlu1 %85  }
  0x8d   :  { %82 = vst.msk [vmem:[#allocation0] sm:$0x1] %vm81_vm13, %v80_v28  }
  0x8e   :  { %88 = vst.msk [vmem:[#allocation0] sm:$0x1] %vm87_vm14, %v86_v29  }
  0x90   :  { %v92_v30 = vpop.permute.xlu0 %91  }
  0x91   :  { %94 = vst.msk [vmem:[#allocation0] sm:$0x1] %vm93_vm15, %v92_v30  }
  0x98   :  { %v99_v31 = vld [vmem:[#allocation0] sm:$0x1] }
  0x99   :  { %102 = vst [vmem:[%s210_s1] sm:$0x1] %v99_v31 }

// kernel: conv_conv_forward.1
= control target key start
LH: loop header
LB: loop body
LE: loop exit
PB: predicated region body
PF: predicated region fallthrough
CT: control target
= control target key end

     0   :  { %s1258_s18 = smov 0   ;;  %s1450_s0 = inlined_call_operand.vmem [shape: f32[2,4,16,16], index: 0, kind: input, shape index: {}]   ;;  %s1451_s1 = inlined_call_operand.vmem [shape: bf16[3,64,128], index: 1, kind: input, shape index: {}]   ;;  %s1452_s2 = inlined_call_operand.vmem [shape: f32[1,128], index: 2, kind: input, shape index: {}]   ;;  %s1453_s3 = inlined_call_operand.vmem [shape: bf16[3,128,128], index: 3, kind: input, shape index: {}]   ;;  %s1454_s4 = inlined_call_operand.vmem [shape: f32[1,128], index: 4, kind: input, shape index: {}]   ;;  %s1455_s5 = inlined_call_operand.vmem [shape: f32[2,16,128], index: 5, kind: output, shape index: {}]  }
   0x1 LB: > { %s926_s19 = sadd.s32 4294967295, %s1221_s18   ;;  %p930_p0 = scmp.ge.s32.totalorder %s1221_s18, 1  ;;  %s1221_s18 = sphi %s1258_s18, %s15_s18  }
   0x2   : > { %p187_p1 = scmp.lt.s32.totalorder %s1221_s18, 3 }
   0x4   : > { %p188_p2 = pnand %p930_p0, %p187_p1 }
   0x5   : > { %p215_p3 = scmp.lt.s32.totalorder (!%p188_p2), %s926_s19, 1  ;;  %s1224_s9 = smov (!%p188_p2), 32  }
   0x6   : > { %191 = sbr.rel (%p188_p2) target bundleno = 605 (0x25d), region = 40  ;;  %s1225_s10 = smov (!%p188_p2), 16  }
   0x7   : > { %s1227_s17 = smov (!%p188_p2), 48  }
   0xb   : > { %v1179_v0 = vld [vmem:[%s1451_s1 + $0x38] sm:$0xff]   ;;  %v1223_v1 = vmov 0.0   ;;  %s1457_s19 = smov (!%p215_p3, %s926_s19), 1  ;;  %v1181_v3 = vld [vmem:[%s1451_s1 + $0x30] sm:$0xff]   ;;  %vm239_vm0 = vcmask 130048   ;;  %v1183_v7 = vld [vmem:[%s1451_s1 + $0x28] sm:$0xff]  }
   0xc   : > { %1070 = vmatprep.subr.bf16.mxu0 %v1223_v1  ;;  %229 = vst [vmem:[#allocation3] sm:$0x1] %v1223_v1  ;;  %230 = vst [vmem:[#allocation3 + $0x11] sm:$0x1] %v1223_v1  ;;  %1082 = vmatprep.subr.bf16.mxu1 %v1223_v1  ;;  %v1180_v2 = vld [vmem:[%s1451_s1 + $0x18] sm:$0xff]   ;;  %s1026_s26 = sshll.u32 %s1457_s19, 6 }
   0xd   : > { %1071 = vmatpush3.bf16.msra.mxu0 %v1179_v0  ;;  %1083 = vmatpush3.bf16.msra.mxu1 %v1180_v2  ;;  %v1182_v4 = vld [vmem:[%s1451_s1 + $0x10] sm:$0xff]   ;;  %s219_s6 = scalar_lea.vmem %s1450_s0, %s1026_s26  ;;  %vm226_vm1 = vcmask 516096   ;;  %v1184_v12 = vld [vmem:[%s1451_s1 + $0x8] sm:$0xff]   ;;  %vm1226_vm2 = vmmov 0   ;;  %v1185_v15 = vld [vmem:[%s1451_s1 + $0x20] sm:$0xff]   ;;  %vm250_vm3 = vcmask 261248  }
   0xe   : > { %1072 = vmatprep.subr.bf16.mxu0 %v1223_v1  ;;  %1084 = vmatprep.subr.bf16.mxu1 %v1223_v1  ;;  %v235_v5 = vld [vmem:[%s219_s6 + $0x20] sm:$0xff]  ;;  %v233_v6 = vld [vmem:[%s219_s6 + $0x10] sm:$0xff]  ;;  %v236_v8 = vld [vmem:[%s219_s6 + $0x28] sm:$0xff]  ;;  %227 = vst.msk [vmem:[#allocation2] sm:$0x1] %vm226_vm1, %v1223_v1  ;;  %vm261_vm4 = vcmask 392448  }
   0xf   : > { %255 = vrot.lane.b32.xlu1 %v235_v5, %s1224_s9  ;;  %244 = vrot.lane.b32.xlu0 %v233_v6, %s1225_s10  ;;  %228 = vst.msk [vmem:[#allocation2 + $0x11] sm:$0x1] %vm226_vm1, %v1223_v1  ;;  %v234_v9 = vld [vmem:[%s219_s6 + $0x18] sm:$0xff]  ;;  %v231_v10 = vld [vmem:[%s219_s6] sm:$0xff]  ;;  %vm272_vm5 = vcmask 523648   ;;  %vm322_vm6 = vcmask 523264  }
  0x10   : > { %v232_v11 = vld [vmem:[%s219_s6 + $0x8] sm:$0xff]  ;;  %240 = vst.msk [vmem:[#allocation2 + $0x1] sm:$0xff] %vm239_vm0, %v231_v10  ;;  %1078 = vmatprep.mubr.msk.bf16.mxu0 %vm1226_vm2, %v1223_v1  ;;  %v238_v13 = vld [vmem:[%s219_s6 + $0x38] sm:$0xff]  ;;  %v237_v14 = vld [vmem:[%s219_s6 + $0x30] sm:$0xff]  ;;  %1090 = vmatprep.mubr.msk.bf16.mxu1 %vm1226_vm2, %v1223_v1 }
  0x11   : > { %1073 = vmatpush3.bf16.msra.mxu0 %v1181_v3  ;;  %1085 = vmatpush3.bf16.msra.mxu1 %v1182_v4  ;;  %241 = vst.msk [vmem:[#allocation2 + $0x9] sm:$0xff] %vm239_vm0, %v232_v11  ;;  %v1186_v16 = vld [vmem:[%s1451_s1] sm:$0xff]   ;;  %v1187_v23 = vld [vmem:[%s1451_s1 + $0x58] sm:$0xff]   ;;  %v1188_v30 = vld [vmem:[%s1451_s1 + $0x50] sm:$0xff]  }
  0x12   : > { %1074 = vmatprep.subr.bf16.mxu0 %v1223_v1  ;;  %1086 = vmatprep.subr.bf16.mxu1 %v1223_v1  ;;  %v1189_v31 = vld [vmem:[%s1451_s1 + $0x48] sm:$0xff]   ;;  %v1190_v32 = vld [vmem:[%s1451_s1 + $0x40] sm:$0xff]   ;;  %v1191_v36 = vld [vmem:[%s1453_s3 + $0x78] sm:$0xff]  }
  0x13   : > { %257 = vrot.lane.b32.xlu1 %v236_v8, %s1224_s9  ;;  %246 = vrot.lane.b32.xlu0 %v234_v9, %s1225_s10  ;;  %v1193_v37 = vld [vmem:[%s1453_s3 + $0x70] sm:$0xff]   ;;  %v1195_v38 = vld [vmem:[%s1453_s3 + $0x68] sm:$0xff]   ;;  %s1027_s9 = sshll.u32 %s1457_s19, 4 }
  0x14   : > { %v1192_v39 = vld [vmem:[%s1453_s3 + $0x38] sm:$0xff]   ;;  %v1194_v40 = vld [vmem:[%s1453_s3 + $0x30] sm:$0xff]   ;;  %v1197_v41 = vld [vmem:[%s1453_s3 + $0x60] sm:$0xff]   ;;  %s224_s12 = scalar_lea.vmem %s1455_s5, %s1027_s9 }
  0x15   : > { %1075 = vmatpush3.bf16.msra.mxu0 %v1183_v7  ;;  %1087 = vmatpush3.bf16.msra.mxu1 %v1184_v12  ;;  %v1196_v42 = vld [vmem:[%s1453_s3 + $0x28] sm:$0xff]   ;;  %v1199_v43 = vld [vmem:[%s1453_s3 + $0x58] sm:$0xff]   ;;  %v1201_v44 = vld [vmem:[%s1453_s3 + $0x50] sm:$0xff]  }
  0x16   : > { %1076 = vmatprep.subr.bf16.mxu0 %v1223_v1  ;;  %1088 = vmatprep.subr.bf16.mxu1 %v1223_v1  ;;  %v1198_v45 = vld [vmem:[%s1453_s3 + $0x20] sm:$0xff]   ;;  %v1203_v46 = vld [vmem:[%s1453_s3 + $0x48] sm:$0xff]   ;;  %v1200_v47 = vld [vmem:[%s1453_s3 + $0x18] sm:$0xff]  }
  0x17   : > { %268 = vrot.lane.b32.xlu1 %v238_v13, %s1227_s17  ;;  %266 = vrot.lane.b32.xlu0 %v237_v14, %s1227_s17  ;;  %v1205_v48 = vld [vmem:[%s1453_s3 + $0x40] sm:$0xff]   ;;  %v1202_v49 = vld [vmem:[%s1453_s3 + $0x10] sm:$0xff]  }
  0x18   : > { %v1204_v50 = vld [vmem:[%s1453_s3 + $0x8] sm:$0xff]   ;;  %v1206_v51 = vld [vmem:[%s1453_s3] sm:$0xff]   ;;  %v1207_v10 = vld [vmem:[%s1453_s3 + $0xb8] sm:$0xff]  }
  0x19   : > { %1077 = vmatpush3.bf16.msra.mxu0 %v1185_v15  ;;  %1089 = vmatpush3.bf16.msra.mxu1 %v1186_v16  ;;  %v966_v62 = vld [vmem:[%s1452_s2] ss:$0 sm:$0xff]  ;;  %v1208_v12 = vld [vmem:[%s1453_s3 + $0xb0] sm:$0xff]   ;;  %v1209_v15 = vld [vmem:[%s1453_s3 + $0xa8] sm:$0xff]  }
  0x1a   : > { %1094 = vmatprep.subr.bf16.mxu0 %v1223_v1  ;;  %1106 = vmatprep.subr.bf16.mxu1 %v1223_v1 }
  0x81   : > { %v256_v17 = vpop.permute.xlu1 %255  ;;  %v245_v18 = vpop.permute.xlu0 %244 }
  0x82   : > { %251 = vst.msk [vmem:[#allocation2 + $0x1] sm:$0xff] %vm250_vm3, %v245_v18  ;;  %v1211_v18 = vld [vmem:[%s1453_s3 + $0x98] sm:$0xff]  }
  0x83   : > { %262 = vst.msk [vmem:[#allocation2 + $0x1] sm:$0xff] %vm261_vm4, %v256_v17  ;;  %v1210_v17 = vld [vmem:[%s1453_s3 + $0xa0] sm:$0xff]  }
  0x85   : > { %v258_v19 = vpop.permute.xlu1 %257  ;;  %v247_v20 = vpop.permute.xlu0 %246 }
  0x86   : > { %252 = vst.msk [vmem:[#allocation2 + $0x9] sm:$0xff] %vm250_vm3, %v247_v20  ;;  %v1213_v20 = vld [vmem:[%s1453_s3 + $0x88] sm:$0xff]  }
  0x87   : > { %263 = vst.msk [vmem:[#allocation2 + $0x9] sm:$0xff] %vm261_vm4, %v258_v19  ;;  %v1212_v19 = vld [vmem:[%s1453_s3 + $0x90] sm:$0xff]  }
  0x89   : > { %v269_v21 = vpop.permute.xlu1 %268  ;;  %v267_v22 = vpop.permute.xlu0 %266 }
  0x8a   : > { %274 = vst.msk [vmem:[#allocation2 + $0x9] sm:$0xff] %vm272_vm5, %v269_v21  ;;  %273 = vst.msk [vmem:[#allocation2 + $0x1] sm:$0xff] %vm272_vm5, %v267_v22  ;;  %v1214_v21 = vld [vmem:[%s1453_s3 + $0x80] sm:$0xff]  }
  0x91   : > { %v286_v24 = vld [vmem:[#allocation2 + $0x1] sm:$0xff]  ;;  %v287_v25 = vld [vmem:[#allocation2 + $0x9] sm:$0xff] }
  0x92   : > { %v275_v26 = vld [vmem:[#allocation2] sm:$0xff]  ;;  %v288_v27 = vpack.c.bf16 %v287_v25, %v286_v24  ;;  %v276_v28 = vld [vmem:[#allocation2 + $0x8] sm:$0xff] }
  0x93   : > { %v277_v29 = vpack.c.bf16 %v276_v28, %v275_v26  ;;  %v435_v33 = vld [vmem:[#allocation2 + $0x2] sm:$0xff]  ;;  %v436_v34 = vld [vmem:[#allocation2 + $0xa] sm:$0xff] }
  0x94   : > { %1079 = vmatmul.mubr.msk.bf16.vlgmr.msra.gmra.mxu0 %vm322_vm6, %v288_v27  ;;  %v437_v35 = vpack.c.bf16 %v436_v34, %v435_v33 }
  0x95   : > { %1091 = vmatmul.mubr.msk.bf16.vlgmr.msra.gmra.mxu1 %vm322_vm6, %v277_v29  ;;  %1095 = vmatpush3.bf16.msra.mxu0 %v1187_v23 }
  0x96   : > { %1096 = vmatprep.subr.bf16.mxu0 %v1223_v1  ;;  %1102 = vmatprep.mubr.msk.bf16.mxu0 %vm1226_vm2, %v1223_v1 }
  0x97   : > { %1122 = vmatprep.mubr.msk.bf16.mxu1 %vm1226_vm2, %v1223_v1  ;;  %1107 = vmatpush3.bf16.msra.mxu1 %v1191_v36 }
  0x98   : > { %1108 = vmatprep.subr.bf16.mxu1 %v1223_v1 }
  0x99   : > { %1097 = vmatpush3.bf16.msra.mxu0 %v1188_v30 }
  0x9a   : > { %1098 = vmatprep.subr.bf16.mxu0 %v1223_v1 }
  0x9b   : > { %1109 = vmatpush3.bf16.msra.mxu1 %v1193_v37 }
  0x9c   : > { %1110 = vmatprep.subr.bf16.mxu1 %v1223_v1 }
  0x9d   : > { %1099 = vmatpush3.bf16.msra.mxu0 %v1189_v31 }
  0x9e   : > { %1100 = vmatprep.subr.bf16.mxu0 %v1223_v1 }
  0x9f   : > { %1111 = vmatpush3.bf16.msra.mxu1 %v1195_v38 }
  0xa0   : > { %1112 = vmatprep.subr.bf16.mxu1 %v1223_v1 }
  0xa1   : > { %1101 = vmatpush3.bf16.msra.mxu0 %v1190_v32 }
  0xa2   : > { %1126 = vmatprep.subr.bf16.mxu0 %v1223_v1 }
  0xa3   : > { %1113 = vmatpush3.bf16.msra.mxu1 %v1197_v41 }
  0xa4   : > { %1103 = vmatmul.mubr.msk.bf16.vlgmr.msra.gmra.mxu0 %vm322_vm6, %v437_v35  ;;  %1114 = vmatprep.subr.bf16.mxu1 %v1223_v1 }
  0xa5   : > { %1142 = vmatprep.mubr.msk.bf16.mxu0 %vm1226_vm2, %v1223_v1  ;;  %1127 = vmatpush3.bf16.msra.mxu0 %v1192_v39 }
  0xa6   : > { %1128 = vmatprep.subr.bf16.mxu0 %v1223_v1 }
  0xa7   : > { %1115 = vmatpush3.bf16.msra.mxu1 %v1199_v43 }
  0xa8   : > { %1116 = vmatprep.subr.bf16.mxu1 %v1223_v1 }
  0xa9   : > { %1129 = vmatpush3.bf16.msra.mxu0 %v1194_v40 }
  0xaa   : > { %1130 = vmatprep.subr.bf16.mxu0 %v1223_v1 }
  0xab   : > { %1117 = vmatpush3.bf16.msra.mxu1 %v1201_v44 }
  0xac   : > { %1118 = vmatprep.subr.bf16.mxu1 %v1223_v1 }
  0xad   : > { %1131 = vmatpush3.bf16.msra.mxu0 %v1196_v42 }
  0xae   : > { %1132 = vmatprep.subr.bf16.mxu0 %v1223_v1 }
  0xaf   : > { %1119 = vmatpush3.bf16.msra.mxu1 %v1203_v46 }
  0xb0   : > { %1120 = vmatprep.subr.bf16.mxu1 %v1223_v1 }
  0xb1   : > { %1133 = vmatpush3.bf16.msra.mxu0 %v1198_v45 }
  0xb2   : > { %1134 = vmatprep.subr.bf16.mxu0 %v1223_v1 }
  0xb3   : > { %1121 = vmatpush3.bf16.msra.mxu1 %v1205_v48 }
  0xb4   : > { %1146 = vmatprep.subr.bf16.mxu1 %v1223_v1 }
  0xb5   : > { %1135 = vmatpush3.bf16.msra.mxu0 %v1200_v47 }
  0xb6   : > { %1136 = vmatprep.subr.bf16.mxu0 %v1223_v1 }
  0xb9   : > { %1137 = vmatpush3.bf16.msra.mxu0 %v1202_v49 }
  0xba   : > { %1138 = vmatprep.subr.bf16.mxu0 %v1223_v1 }
  0xbd   : > { %1139 = vmatpush3.bf16.msra.mxu0 %v1204_v50 }
  0xbe   : > { %1140 = vmatprep.subr.bf16.mxu0 %v1223_v1 }
  0xc1   : > { %1141 = vmatpush3.bf16.msra.mxu0 %v1206_v51 }
 0x154   : > { %v360_v52 = vpop.f32.mrf.mxu0 }
 0x155   : > { %v428_v53 = vpop.f32.mrf.mxu1 }
 0x156   : > { %v1080_v54 = vpop.f32.mrf.mxu0  ;;  %v429_v60 = vadd.f32 %v428_v53, %v360_v52 }
 0x157   : > { %v1092_v55 = vpop.f32.mrf.mxu1 }
 0x158   : > { %v363_v56 = vpop.f32.mrf.mxu0 }
 0x159   : > { %v431_v57 = vpop.f32.mrf.mxu1 }
 0x15a   : > { %v1081_v58 = vpop.f32.mrf.mxu0  ;;  %v432_v2 = vadd.f32 %v431_v57, %v363_v56 }
 0x15b   : > { %v1093_v59 = vpop.f32.mrf.mxu1 }
 0x164   : > { %v508_v61 = vpop.f32.mrf.mxu0 }
 0x165   : > { %v515_v63 = vadd.f32 %v508_v61, %v429_v60 }
 0x166   : > { %v1104_v0 = vpop.f32.mrf.mxu0 }
 0x167   : > { %v524_v3 = vadd.f32 %v966_v62, %v515_v63 }
 0x168   : > { %v511_v4 = vpop.f32.mrf.mxu0 }
 0x169   : > { %v526_v5 = vmax.f32 %v524_v3, 0.0  ;;  %v516_v6 = vadd.f32 %v511_v4, %v432_v2 }
 0x16a   : > { %v1105_v7 = vpop.f32.mrf.mxu0 }
 0x16b   : > { %528 = vst [vmem:[#allocation3 + $0x1] sm:$0xff] %v526_v5  ;;  %v525_v8 = vadd.f32 %v966_v62, %v516_v6 }
 0x16d   : > { %v527_v9 = vmax.f32 %v525_v8, 0.0 }
 0x16f   : > { %529 = vst [vmem:[#allocation3 + $0x9] sm:$0xff] %v527_v9  ;;  %v551_v11 = vpack.c.bf16 %v527_v9, %v526_v5 }
 0x171   : > { %1123 = vmatmul.mubr.bf16.vlgmr.msra.gmra.mxu1 %v551_v11 }
 0x172   : > { %1147 = vmatpush3.bf16.msra.mxu1 %v1207_v10  ;;  %1162 = vmatprep.mubr.msk.bf16.mxu1 %vm1226_vm2, %v1223_v1  ;;  %v530_v13 = vld [vmem:[#allocation3] sm:$0xff] }
 0x173   : > { %1148 = vmatprep.subr.bf16.mxu1 %v1223_v1 }
 0x176   : > { %v531_v14 = vld [vmem:[#allocation3 + $0x8] sm:$0xff]  ;;  %1149 = vmatpush3.bf16.msra.mxu1 %v1208_v12 }
 0x177   : > { %v532_v16 = vpack.c.bf16 %v531_v14, %v530_v13  ;;  %1150 = vmatprep.subr.bf16.mxu1 %v1223_v1  ;;  %v747_v22 = vld [vmem:[#allocation3 + $0x2] sm:$0xff]  ;;  %v748_v23 = vld [vmem:[#allocation3 + $0xa] sm:$0xff] }
 0x178   : > { %v749_v24 = vpack.c.bf16 %v748_v23, %v747_v22 }
 0x179   : > { %1143 = vmatmul.mubr.bf16.vlgmr.msra.gmra.mxu0 %v532_v16 }
 0x17a   : > { %1151 = vmatpush3.bf16.msra.mxu1 %v1209_v15 }
 0x17b   : > { %1152 = vmatprep.subr.bf16.mxu1 %v1223_v1 }
 0x17e   : > { %1153 = vmatpush3.bf16.msra.mxu1 %v1210_v17 }
 0x17f   : > { %1154 = vmatprep.subr.bf16.mxu1 %v1223_v1 }
 0x182   : > { %1155 = vmatpush3.bf16.msra.mxu1 %v1211_v18 }
 0x183   : > { %1156 = vmatprep.subr.bf16.mxu1 %v1223_v1 }
 0x186   : > { %1157 = vmatpush3.bf16.msra.mxu1 %v1212_v19 }
 0x187   : > { %1158 = vmatprep.subr.bf16.mxu1 %v1223_v1 }
 0x18a   : > { %1159 = vmatpush3.bf16.msra.mxu1 %v1213_v20 }
 0x18b   : > { %1160 = vmatprep.subr.bf16.mxu1 %v1223_v1  ;;  %v1023_v1 = vld [vmem:[%s1454_s4] ss:$0 sm:$0xff] }
 0x18e   : > { %1161 = vmatpush3.bf16.msra.mxu1 %v1214_v21 }
 0x191   : > { %1163 = vmatmul.mubr.bf16.vlgmr.msra.gmra.mxu1 %v749_v24 }
 0x231   : > { %v651_v25 = vpop.f32.mrf.mxu1 }
 0x233   : > { %v1124_v26 = vpop.f32.mrf.mxu1 }
 0x235   : > { %v654_v27 = vpop.f32.mrf.mxu1 }
 0x237   : > { %v1125_v28 = vpop.f32.mrf.mxu1 }
 0x239   : > { %v740_v29 = vpop.f32.mrf.mxu0 }
 0x23a   : > { %v741_v33 = vadd.f32 %v740_v29, %v651_v25 }
 0x23b   : > { %v1144_v30 = vpop.f32.mrf.mxu0 }
 0x23d   : > { %v743_v31 = vpop.f32.mrf.mxu0 }
 0x23e   : > { %v744_v37 = vadd.f32 %v743_v31, %v654_v27 }
 0x23f   : > { %v1145_v32 = vpop.f32.mrf.mxu0 }
 0x251   : > { %v849_v34 = vpop.f32.mrf.mxu1 }
 0x252   : > { %v856_v35 = vadd.f32 %v849_v34, %v741_v33 }
 0x253   : > { %v1164_v36 = vpop.f32.mrf.mxu1 }
 0x254   : > { %v865_v38 = vadd.f32 %v1023_v1, %v856_v35 }
 0x255   : > { %v852_v39 = vpop.f32.mrf.mxu1 }
 0x256   : > { %v867_v40 = vmax.f32 %v865_v38, 0.0  ;;  %v857_v41 = vadd.f32 %v852_v39, %v744_v37 }
 0x257   : > { %v1165_v42 = vpop.f32.mrf.mxu1 }
 0x258   : > { %869 = vst [vmem:[%s224_s12] sm:$0xff] %v867_v40  ;;  %v866_v43 = vadd.f32 %v1023_v1, %v857_v41 }
 0x25a   : > { %v868_v44 = vmax.f32 %v866_v43, 0.0 }
 0x25c   : > { %870 = vst [vmem:[%s224_s12 + $0x8] sm:$0xff] %v868_v44 }
 0x25d PF: > { %s15_s18 = sadd.s32 1, %s1221_s18  }
 0x25e   : > { %p12_p4 = scmp.ge.s32.totalorder %s15_s18, 4  }
 0x260   :  { %14 = sbr.rel (!%p12_p4) target bundleno = 1 (0x1), region = 74 }

</bundles_post_ra>
